<compile_context>
chip_gen: v6e
topology: v6e:2x2x1
jax: 0.10.0
libtpu: 0.0.40
codegen_flags: <defaults>
</compile_context>

<pallas_src>
import functools

import jax
import jax.numpy as jnp
from jax.experimental import pallas as pl
from jax.experimental.pallas import tpu as pltpu


def _round_up(x: int, m: int) -> int:
    return ((x + m - 1) // m) * m


def _pick_batch_tile(batch: int) -> int:
    """Largest divisor of `batch` <= 8 that still leaves >= 2 batch blocks."""
    if batch <= 1:
        return 1
    best = 1
    for cand in range(1, min(batch, 8) + 1):
        if batch % cand == 0 and batch // cand >= 2:
            best = cand
    if best == 1 and batch > 8:
        # Awkward (e.g. prime) batch: accept a ragged batch tail; the partial
        # last block's garbage rows never reach HBM (output store is clipped).
        best = 8
    return best


def _pick_seq_tile(batch_tile: int, seq: int, dim: int, itemsize: int,
                   seq_tile, tile_bytes: int):
    """Sequence tile: a multiple of 8 (or the full sequence), sized so the
    per-step VMEM footprint (token tile + lane-padded mask tile) ~ tile_bytes."""
    if seq_tile is not None:
        target = max(1, int(seq_tile))
    else:
        row_bytes = max(1, batch_tile * (dim * itemsize + 512))
        target = max(8, tile_bytes // row_bytes)
    if target >= seq:
        return seq, 1                      # single block, no ragged tail
    ts = max(8, (target // 8) * 8)
    # Prefer a tile that divides seq exactly (skips the ragged-tail select).
    for cand in range(ts, max(8, ts // 2) - 1, -8):
        if seq % cand == 0:
            ts = cand
            break
    return ts, -(-seq // ts)


def _pooling_kernel(mask_ref, cls_ref, tok_ref, out_ref, *scratch,
                    emb_dim, seq_len, seq_tile, has_tail,
                    use_cls, use_max, use_mean, use_mean_sqrt):
    """Grid = (batch_blocks, seq_blocks); seq axis is the reduction axis."""
    s = pl.program_id(1)
    num_s = pl.num_programs(1)
    use_sum = use_mean or use_mean_sqrt

    idx = 0
    max_acc = sum_acc = cnt_acc = None
    if use_max:
        max_acc = scratch[idx]
        idx += 1
    if use_sum:
        sum_acc = scratch[idx]
        cnt_acc = scratch[idx + 1]
        idx += 2

    if use_max or use_sum:
        @pl.when(s == 0)
        def _init():
            if use_max:
                max_acc[...] = jnp.full_like(max_acc, jnp.float32(-1e9))
            if use_sum:
                sum_acc[...] = jnp.zeros_like(sum_acc)
                cnt_acc[...] = jnp.zeros_like(cnt_acc)

        tok = tok_ref[...]       # (TB, TS, D)  native dtype (bf16 stays bf16)
        mask = mask_ref[...]     # (TB, TS, 1)  f32, zero-padded past seq_len

        if use_max:
            # Select + max run in the token dtype (packed bf16 on v6e/v7x);
            # only the (TB, 1, D) tile result is upcast.  Sentinel matches the
            # PyTorch module's -1e9 (fully-masked rows -> -1e9).
            sentinel = jnp.asarray(-1e9, dtype=tok.dtype)
            masked = jnp.where(mask != 0.0, tok, sentinel)
            tile_max = jnp.max(masked, axis=1, keepdims=True).astype(jnp.float32)
            max_acc[...] = jnp.maximum(max_acc[...], tile_max)

        if use_sum:
            if has_tail:
                # S % TS != 0: tail rows of the last tile were never DMA'd
                # (stale VMEM, possibly NaN); 0 * NaN would poison the sum, so
                # zero them with an iota validity select before accumulating.
                seq_idx = s * seq_tile + jax.lax.broadcasted_iota(
                    jnp.int32, (1, seq_tile, 1), 1)
                tok_sum = jnp.where(seq_idx < seq_len, tok,
                                    jnp.asarray(0, dtype=tok.dtype))
            else:
                tok_sum = tok
            cnt_acc[...] += jnp.sum(mask, axis=1, keepdims=True)     # (TB,1,1)
            if tok.dtype == jnp.float32:
                # f32: exact VPU path (matches the pure-f32 reference).
                sum_acc[...] += jnp.sum(tok_sum * mask, axis=1, keepdims=True)
            else:
                # bf16/f16: offload cast+mul+reduce to the idle MXU, f32 acc.
                contrib = jax.lax.dot_general(
                    mask.astype(tok.dtype), tok_sum,
                    dimension_numbers=(((1,), (1,)), ((0,), (0,))),
                    preferred_element_type=jnp.float32)              # (TB,1,D)
                sum_acc[...] += contrib

    # ---- finalize: direct slice stores of each pooled feature ----
    @pl.when(s == num_s - 1)
    def _finalize():
        od = out_ref.dtype
        col = 0
        if use_cls:
            out_ref[:, :, col:col + emb_dim] = cls_ref[...].astype(od)
            col += emb_dim
        if use_max:
            out_ref[:, :, col:col + emb_dim] = max_acc[...].astype(od)
            col += emb_dim
        if use_sum:
            cnt = jnp.maximum(cnt_acc[...], jnp.float32(1e-9))  # clamp(min=1e-9)
            if use_mean:
                out_ref[:, :, col:col + emb_dim] = (sum_acc[...] / cnt).astype(od)
                col += emb_dim
            if use_mean_sqrt:
                out_ref[:, :, col:col + emb_dim] = (
                    sum_acc[...] / jnp.sqrt(cnt)).astype(od)
                col += emb_dim


class Pooling:
    """JAX/Pallas port of the PyTorch Pooling module (forward only)."""

    def __init__(self,
                 word_embedding_dimension: int,
                 pooling_mode_cls_token: bool = False,
                 pooling_mode_max_tokens: bool = False,
                 pooling_mode_mean_tokens: bool = True,
                 pooling_mode_mean_sqrt_len_tokens: bool = False,
                 pooling_mode_mean_last_2_tokens: bool = False,
                 pooling_mode_mean_first_last_tokens: bool = False):
        if pooling_mode_mean_last_2_tokens or pooling_mode_mean_first_last_tokens:
            # TODO(synk): mean_last_2 / mean_first_last need all_layer_embeddings
            # (per-layer hidden states); refuse instead of emitting garbage.
            raise NotImplementedError(
                "pooling_mode_mean_last_2_tokens / pooling_mode_mean_first_last_tokens "
                "require all_layer_embeddings and are not supported by this kernel")
        self.word_embedding_dimension = word_embedding_dimension
        self.pooling_mode_cls_token = pooling_mode_cls_token
        self.pooling_mode_max_tokens = pooling_mode_max_tokens
        self.pooling_mode_mean_tokens = pooling_mode_mean_tokens
        self.pooling_mode_mean_sqrt_len_tokens = pooling_mode_mean_sqrt_len_tokens
        self.pooling_mode_mean_last_2_tokens = pooling_mode_mean_last_2_tokens
        self.pooling_mode_mean_first_last_tokens = pooling_mode_mean_first_last_tokens

        self._multiplier = sum([pooling_mode_cls_token,
                                pooling_mode_max_tokens,
                                pooling_mode_mean_tokens,
                                pooling_mode_mean_sqrt_len_tokens])
        if self._multiplier == 0:
            raise ValueError("at least one pooling mode must be enabled")
        self.pooling_output_dimension = self._multiplier * word_embedding_dimension

    def get_sentence_embedding_dimension(self):
        return self.pooling_output_dimension

    def __call__(self, token_embeddings, cls_token_embeddings, attention_mask,
                 all_layer_embeddings=None, token_weights_sum=None,
                 *, seq_tile=None, batch_tile=None, tile_bytes=8 * 1024 * 1024):
        if all_layer_embeddings is not None:
            # TODO(synk): all_layer_embeddings-based modes are not implemented.
            raise NotImplementedError("all_layer_embeddings is not supported")
        if token_weights_sum is not None:
            # TODO(synk): custom token_weights_sum denominator is not plumbed
            # into the kernel (would replace cnt_acc in the finalize branch).
            raise NotImplementedError("token_weights_sum is not supported")

        B, S, D = token_embeddings.shape
        assert D == self.word_embedding_dimension
        assert cls_token_embeddings.shape == (B, D)
        assert attention_mask.shape[:2] == (B, S)

        use_cls = self.pooling_mode_cls_token
        use_max = self.pooling_mode_max_tokens
        use_mean = self.pooling_mode_mean_tokens
        use_mean_sqrt = self.pooling_mode_mean_sqrt_len_tokens
        use_sum = use_mean or use_mean_sqrt
        out_dim = self._multiplier * D
        out_dtype = token_embeddings.dtype
        itemsize = jnp.dtype(out_dtype).itemsize

        # ---- tiling: >=2 batch blocks (v7x megacore), big seq tiles ----
        TB = int(batch_tile) if batch_tile is not None else _pick_batch_tile(B)
        TB = max(1, min(TB, B))
        TS, n_seq = _pick_seq_tile(TB, S, D, itemsize, seq_tile, tile_bytes)
        Sp = TS * n_seq
        n_batch = -(-B // TB)

        # Only the tiny mask is zero-padded; token_embeddings stream as-is.
        mask3 = attention_mask.astype(jnp.float32).reshape(B, S, 1)
        if Sp != S:
            mask3 = jnp.pad(mask3, ((0, 0), (0, Sp - S), (0, 0)))
        cls3 = cls_token_embeddings.reshape(B, 1, D)   # free reshape

        # Scratch only for the enabled modes.
        scratch = []
        if use_max:
            scratch.append(pltpu.VMEM((TB, 1, D), jnp.float32))
        if use_sum:
            scratch.append(pltpu.VMEM((TB, 1, D), jnp.float32))
            scratch.append(pltpu.VMEM((TB, 1, 1), jnp.float32))

        # VMEM footprint (double-buffered pipeline buffers + scratch); clamp
        # to 48 MiB so the request is always valid on v7x (64 MiB physical).
        tok_tile_bytes = TB * TS * D * itemsize
        mask_tile_bytes = TB * (_round_up(TS, 8) // 8) * 4096
        cls_bytes = TB * 8 * _round_up(D, 128) * itemsize
        out_bytes = TB * 8 * _round_up(out_dim, 128) * itemsize
        acc_bytes = (TB * 8 * _round_up(D, 128) * 4
                     * (int(use_max) + int(use_sum)) + TB * 4096)
        need = 2 * (tok_tile_bytes + mask_tile_bytes + cls_bytes + out_bytes) + acc_bytes
        vmem_limit = int(min(max(need + (4 << 20), 32 << 20), 48 << 20))

        kernel = functools.partial(
            _pooling_kernel,
            emb_dim=D, seq_len=S, seq_tile=TS, has_tail=(Sp != S),
            use_cls=use_cls, use_max=use_max,
            use_mean=use_mean, use_mean_sqrt=use_mean_sqrt)

        out = pl.pallas_call(
            kernel,
            out_shape=jax.ShapeDtypeStruct((B, 1, out_dim), out_dtype),
            grid=(n_batch, n_seq),
            in_specs=[
                pl.BlockSpec((TB, TS, 1), lambda b, s: (b, s, 0)),   # mask
                pl.BlockSpec((TB, 1, D), lambda b, s: (b, 0, 0)),    # cls (seq-invariant)
                pl.BlockSpec((TB, TS, D), lambda b, s: (b, s, 0)),   # tokens (no padding)
            ],
            out_specs=pl.BlockSpec((TB, 1, out_dim), lambda b, s: (b, 0, 0)),
            scratch_shapes=scratch,
            compiler_params=pltpu.CompilerParams(
                dimension_semantics=("parallel", "arbitrary"),
                vmem_limit_bytes=vmem_limit,
            ),
        )(mask3, cls3, token_embeddings)

        out = out.reshape(B, out_dim)
        assert out.shape[1] == self.pooling_output_dimension
        return out


def _reference(token_embeddings, cls_token_embeddings, attention_mask, pooler):
    """Pure-JAX reference mirroring the PyTorch forward."""
    outs = []
    tok = token_embeddings.astype(jnp.float32)
    cls = cls_token_embeddings.astype(jnp.float32)
    mask = attention_mask.astype(jnp.float32)[:, :, None]
    if pooler.pooling_mode_cls_token:
        outs.append(cls)
    if pooler.pooling_mode_max_tokens:
        outs.append(jnp.max(jnp.where(mask == 0.0, -1e9, tok), axis=1))
    if pooler.pooling_mode_mean_tokens or pooler.pooling_mode_mean_sqrt_len_tokens:
        sum_emb = jnp.sum(tok * mask, axis=1)
        sum_mask = jnp.maximum(jnp.sum(mask, axis=1), 1e-9)
        if pooler.pooling_mode_mean_tokens:
            outs.append(sum_emb / sum_mask)
        if pooler.pooling_mode_mean_sqrt_len_tokens:
            outs.append(sum_emb / jnp.sqrt(sum_mask))
    return jnp.concatenate(outs, axis=1)


if __name__ == "__main__":
    key = jax.random.PRNGKey(0)

    # ---- Config A: all 4 modes, f32, ragged seq tail (S=28, TS=16), 3 batch blocks ----
    B, S, D = 3, 28, 48
    k1, k2, key = jax.random.split(key, 3)
    tok_a = jax.random.normal(k1, (B, S, D), dtype=jnp.float32)
    cls_a = jax.random.normal(k2, (B, D), dtype=jnp.float32)
    lengths_a = jnp.array([28, 13, 5], dtype=jnp.int32)
    mask_a = (jnp.arange(S)[None, :] < lengths_a[:, None]).astype(jnp.float32)

    pooler_a = Pooling(word_embedding_dimension=D,
                       pooling_mode_cls_token=True,
                       pooling_mode_max_tokens=True,
                       pooling_mode_mean_tokens=True,
                       pooling_mode_mean_sqrt_len_tokens=True)
    out_a = jax.block_until_ready(pooler_a(tok_a, cls_a, mask_a, seq_tile=16))
    ref_a = _reference(tok_a, cls_a, mask_a, pooler_a)
    assert out_a.shape == (B, pooler_a.pooling_output_dimension)
    assert jnp.allclose(out_a, ref_a, atol=2e-5, rtol=2e-5), "config A mismatch"

    # ---- Config B: mean-only, bf16 (MXU masked-sum path), 2 batch x 4 seq blocks ----
    B2, S2, D2 = 8, 32, 128
    k3, k4, key = jax.random.split(key, 3)
    tok_b = jax.random.normal(k3, (B2, S2, D2), dtype=jnp.float32).astype(jnp.bfloat16)
    cls_b = jax.random.normal(k4, (B2, D2), dtype=jnp.float32).astype(jnp.bfloat16)
    lengths_b = jnp.array([32, 17, 1, 9, 32, 0, 23, 8], dtype=jnp.int32)
    mask_b = (jnp.arange(S2)[None, :] < lengths_b[:, None]).astype(jnp.float32)

    pooler_b = Pooling(word_embedding_dimension=D2, pooling_mode_mean_tokens=True)
    out_b = jax.block_until_ready(pooler_b(tok_b, cls_b, mask_b, seq_tile=8))
    ref_b = _reference(tok_b, cls_b, mask_b, pooler_b)
    assert out_b.shape == (B2, pooler_b.pooling_output_dimension)
    assert out_b.dtype == jnp.bfloat16
    assert jnp.allclose(out_b.astype(jnp.float32), ref_b, atol=2e-2, rtol=2e-2), \
        "config B mismatch"

    # ---- Config C: cls+max only, f32, single full-seq block (S=13 not multiple of 8) ----
    B3, S3, D3 = 2, 13, 32
    k5, k6, key = jax.random.split(key, 3)
    tok_c = jax.random.normal(k5, (B3, S3, D3), dtype=jnp.float32)
    cls_c = jax.random.normal(k6, (B3, D3), dtype=jnp.float32)
    lengths_c = jnp.array([13, 4], dtype=jnp.int32)
    mask_c = (jnp.arange(S3)[None, :] < lengths_c[:, None]).astype(jnp.float32)

    pooler_c = Pooling(word_embedding_dimension=D3,
                       pooling_mode_cls_token=True,
                       pooling_mode_max_tokens=True,
                       pooling_mode_mean_tokens=False)
    out_c = jax.block_until_ready(pooler_c(tok_c, cls_c, mask_c))
    ref_c = _reference(tok_c, cls_c, mask_c, pooler_c)
    assert out_c.shape == (B3, pooler_c.pooling_output_dimension)
    assert jnp.allclose(out_c, ref_c, atol=1e-6, rtol=1e-6), "config C mismatch"

    print("KERNEL_OK")
</pallas_src>

<mosaic_0001>
module attributes {stable_mosaic.version = 11 : i64} {
  func.func @_pooling_kernel(%arg0: i32, %arg1: i32, %arg2: memref<1x16x1xf32, #tpu.memory_space<vmem>>, %arg3: memref<1x1x48xf32, #tpu.memory_space<vmem>>, %arg4: memref<1x16x48xf32, #tpu.memory_space<vmem>>, %arg5: memref<1x1x192xf32, #tpu.memory_space<vmem>>, %arg6: memref<1x1x48xf32, #tpu.memory_space<vmem>>, %arg7: memref<1x1x48xf32, #tpu.memory_space<vmem>>, %arg8: memref<1x1x1xf32, #tpu.memory_space<vmem>>) attributes {dimension_semantics = [#tpu.dimension_semantics<parallel>, #tpu.dimension_semantics<arbitrary>], iteration_bounds = array<i64: 3, 2>, scalar_prefetch = 0 : i64, scratch_operands = 3 : i64, tpu.core_type = #tpu.core_type<tc>, window_params = [{transform_indices = @transform_0, window_bounds = array<i64: 1, 16, 1>}, {transform_indices = @transform_1, window_bounds = array<i64: 1, 1, 48>}, {transform_indices = @transform_2, window_bounds = array<i64: 1, 16, 48>}, {transform_indices = @transform_3, window_bounds = array<i64: 1, 1, 192>}]} {
    %c0_i32 = arith.constant 0 : i32
    %0 = arith.cmpi eq, %arg1, %c0_i32 : i32
    %1 = arith.extui %0 : i1 to i32
    %c0_i32_0 = arith.constant 0 : i32
    %2 = arith.cmpi ne, %1, %c0_i32_0 : i32
    scf.if %2 {
      %cst_30 = arith.constant -1.000000e+09 : f32
      %41 = vector.broadcast %cst_30 : f32 to vector<1x1x48xf32>
      %c0_31 = arith.constant 0 : index
      %c0_32 = arith.constant 0 : index
      %c0_33 = arith.constant 0 : index
      %42 = vector.load %arg6[%c0_31, %c0_32, %c0_33] : memref<1x1x48xf32, #tpu.memory_space<vmem>>, vector<1x1x48xf32>
      tpu.vector_store %arg6[%c0_31, %c0_32, %c0_33], %41 {strides = array<i32>} : memref<1x1x48xf32, #tpu.memory_space<vmem>>, vector<1x1x48xf32>,
      %cst_34 = arith.constant 0.000000e+00 : f32
      %43 = vector.broadcast %cst_34 : f32 to vector<1x1x48xf32>
      %c0_35 = arith.constant 0 : index
      %c0_36 = arith.constant 0 : index
      %c0_37 = arith.constant 0 : index
      %44 = vector.load %arg7[%c0_35, %c0_36, %c0_37] : memref<1x1x48xf32, #tpu.memory_space<vmem>>, vector<1x1x48xf32>
      tpu.vector_store %arg7[%c0_35, %c0_36, %c0_37], %43 {strides = array<i32>} : memref<1x1x48xf32, #tpu.memory_space<vmem>>, vector<1x1x48xf32>,
      %cst_38 = arith.constant 0.000000e+00 : f32
      %45 = vector.broadcast %cst_38 : f32 to vector<1x1x1xf32>
      %c0_39 = arith.constant 0 : index
      %c0_40 = arith.constant 0 : index
      %c0_41 = arith.constant 0 : index
      %46 = vector.load %arg8[%c0_39, %c0_40, %c0_41] : memref<1x1x1xf32, #tpu.memory_space<vmem>>, vector<1x1x1xf32>
      tpu.vector_store %arg8[%c0_39, %c0_40, %c0_41], %45 {strides = array<i32>} : memref<1x1x1xf32, #tpu.memory_space<vmem>>, vector<1x1x1xf32>,
    } else {
    }
    %c0 = arith.constant 0 : index
    %c0_1 = arith.constant 0 : index
    %c0_2 = arith.constant 0 : index
    %3 = vector.load %arg4[%c0, %c0_1, %c0_2] : memref<1x16x48xf32, #tpu.memory_space<vmem>>, vector<1x16x48xf32>
    %c0_3 = arith.constant 0 : index
    %c0_4 = arith.constant 0 : index
    %c0_5 = arith.constant 0 : index
    %4 = vector.load %arg2[%c0_3, %c0_4, %c0_5] : memref<1x16x1xf32, #tpu.memory_space<vmem>>, vector<1x16x1xf32>
    %cst = arith.constant 0.000000e+00 : f32
    %5 = vector.broadcast %cst : f32 to vector<1x16x1xf32>
    %6 = arith.cmpf one, %4, %5 : vector<1x16x1xf32>
    %cst_6 = arith.constant -1.000000e+09 : f32
    %7 = vector.shape_cast %6 : vector<1x16x1xi1> to vector<1x16x1xi1>
    %8 = vector.broadcast %7 : vector<1x16x1xi1> to vector<1x16x48xi1>
    %9 = vector.broadcast %cst_6 : f32 to vector<1x16x48xf32>
    %10 = arith.select %8, %3, %9 : vector<1x16x48xi1>, vector<1x16x48xf32>
    %cst_7 = arith.constant dense<0xFF800000> : vector<1x48xf32>
    %11 = vector.multi_reduction <maximumf>, %10, %cst_7 [1] : vector<1x16x48xf32> to vector<1x48xf32>
    %12 = vector.shape_cast %11 : vector<1x48xf32> to vector<1x1x48xf32>
    %c0_8 = arith.constant 0 : index
    %c0_9 = arith.constant 0 : index
    %c0_10 = arith.constant 0 : index
    %13 = vector.load %arg6[%c0_8, %c0_9, %c0_10] : memref<1x1x48xf32, #tpu.memory_space<vmem>>, vector<1x1x48xf32>
    %14 = arith.maximumf %13, %12 : vector<1x1x48xf32>
    %c0_11 = arith.constant 0 : index
    %c0_12 = arith.constant 0 : index
    %c0_13 = arith.constant 0 : index
    %15 = vector.load %arg6[%c0_11, %c0_12, %c0_13] : memref<1x1x48xf32, #tpu.memory_space<vmem>>, vector<1x1x48xf32>
    tpu.vector_store %arg6[%c0_11, %c0_12, %c0_13], %14 {strides = array<i32>} : memref<1x1x48xf32, #tpu.memory_space<vmem>>, vector<1x1x48xf32>,
    %c16_i32 = arith.constant 16 : i32
    %16 = arith.muli %arg1, %c16_i32 : i32
    %17 = tpu.iota {dimensions = array<i32: 1>} : vector<1x16x1xi32>
    %18 = vector.broadcast %16 : i32 to vector<1x16x1xi32>
    %19 = arith.addi %18, %17 : vector<1x16x1xi32>
    %c28_i32 = arith.constant 28 : i32
    %20 = vector.broadcast %c28_i32 : i32 to vector<1x16x1xi32>
    %21 = arith.cmpi slt, %19, %20 : vector<1x16x1xi32>
    %cst_14 = arith.constant 0.000000e+00 : f32
    %22 = vector.shape_cast %21 : vector<1x16x1xi1> to vector<1x16x1xi1>
    %23 = vector.broadcast %22 : vector<1x16x1xi1> to vector<1x16x48xi1>
    %24 = vector.broadcast %cst_14 : f32 to vector<1x16x48xf32>
    %25 = arith.select %23, %3, %24 : vector<1x16x48xi1>, vector<1x16x48xf32>
    %c0_15 = arith.constant 0 : index
    %c0_16 = arith.constant 0 : index
    %c0_17 = arith.constant 0 : index
    %26 = vector.load %arg8[%c0_15, %c0_16, %c0_17] : memref<1x1x1xf32, #tpu.memory_space<vmem>>, vector<1x1x1xf32>
    %cst_18 = arith.constant dense<0.000000e+00> : vector<1x1xf32>
    %27 = vector.multi_reduction <add>, %4, %cst_18 [1] : vector<1x16x1xf32> to vector<1x1xf32>
    %28 = vector.shape_cast %27 : vector<1x1xf32> to vector<1x1x1xf32>
    %29 = arith.addf %26, %28 : vector<1x1x1xf32>
    %c0_19 = arith.constant 0 : index
    %c0_20 = arith.constant 0 : index
    %c0_21 = arith.constant 0 : index
    %30 = vector.load %arg8[%c0_19, %c0_20, %c0_21] : memref<1x1x1xf32, #tpu.memory_space<vmem>>, vector<1x1x1xf32>
    tpu.vector_store %arg8[%c0_19, %c0_20, %c0_21], %29 {strides = array<i32>} : memref<1x1x1xf32, #tpu.memory_space<vmem>>, vector<1x1x1xf32>,
    %c0_22 = arith.constant 0 : index
    %c0_23 = arith.constant 0 : index
    %c0_24 = arith.constant 0 : index
    %31 = vector.load %arg7[%c0_22, %c0_23, %c0_24] : memref<1x1x48xf32, #tpu.memory_space<vmem>>, vector<1x1x48xf32>
    %32 = vector.broadcast %4 : vector<1x16x1xf32> to vector<1x16x48xf32>
    %33 = arith.mulf %25, %32 : vector<1x16x48xf32>
    %cst_25 = arith.constant dense<0.000000e+00> : vector<1x48xf32>
    %34 = vector.multi_reduction <add>, %33, %cst_25 [1] : vector<1x16x48xf32> to vector<1x48xf32>
    %35 = vector.shape_cast %34 : vector<1x48xf32> to vector<1x1x48xf32>
    %36 = arith.addf %31, %35 : vector<1x1x48xf32>
    %c0_26 = arith.constant 0 : index
    %c0_27 = arith.constant 0 : index
    %c0_28 = arith.constant 0 : index
    %37 = vector.load %arg7[%c0_26, %c0_27, %c0_28] : memref<1x1x48xf32, #tpu.memory_space<vmem>>, vector<1x1x48xf32>
    tpu.vector_store %arg7[%c0_26, %c0_27, %c0_28], %36 {strides = array<i32>} : memref<1x1x48xf32, #tpu.memory_space<vmem>>, vector<1x1x48xf32>,
    %c1_i32 = arith.constant 1 : i32
    %38 = arith.cmpi eq, %arg1, %c1_i32 : i32
    %39 = arith.extui %38 : i1 to i32
    %c0_i32_29 = arith.constant 0 : i32
    %40 = arith.cmpi ne, %39, %c0_i32_29 : i32
    scf.if %40 {
      %c0_30 = arith.constant 0 : index
      %c0_31 = arith.constant 0 : index
      %c0_32 = arith.constant 0 : index
      %41 = vector.load %arg3[%c0_30, %c0_31, %c0_32] : memref<1x1x48xf32, #tpu.memory_space<vmem>>, vector<1x1x48xf32>
      %c0_33 = arith.constant 0 : index
      %c0_34 = arith.constant 0 : index
      %c0_35 = arith.constant 0 : index
      %42 = vector.load %arg5[%c0_33, %c0_34, %c0_35] : memref<1x1x192xf32, #tpu.memory_space<vmem>>, vector<1x1x48xf32>
      tpu.vector_store %arg5[%c0_33, %c0_34, %c0_35], %41 {strides = array<i32>} : memref<1x1x192xf32, #tpu.memory_space<vmem>>, vector<1x1x48xf32>,
      %c0_36 = arith.constant 0 : index
      %c0_37 = arith.constant 0 : index
      %c0_38 = arith.constant 0 : index
      %43 = vector.load %arg6[%c0_36, %c0_37, %c0_38] : memref<1x1x48xf32, #tpu.memory_space<vmem>>, vector<1x1x48xf32>
      %c0_39 = arith.constant 0 : index
      %c0_40 = arith.constant 0 : index
      %c48 = arith.constant 48 : index
      %44 = vector.load %arg5[%c0_39, %c0_40, %c48] : memref<1x1x192xf32, #tpu.memory_space<vmem>>, vector<1x1x48xf32>
      tpu.vector_store %arg5[%c0_39, %c0_40, %c48], %43 {strides = array<i32>} : memref<1x1x192xf32, #tpu.memory_space<vmem>>, vector<1x1x48xf32>,
      %c0_41 = arith.constant 0 : index
      %c0_42 = arith.constant 0 : index
      %c0_43 = arith.constant 0 : index
      %45 = vector.load %arg8[%c0_41, %c0_42, %c0_43] : memref<1x1x1xf32, #tpu.memory_space<vmem>>, vector<1x1x1xf32>
      %cst_44 = arith.constant 9.99999971E-10 : f32
      %46 = vector.broadcast %cst_44 : f32 to vector<1x1x1xf32>
      %47 = arith.maximumf %45, %46 : vector<1x1x1xf32>
      %c0_45 = arith.constant 0 : index
      %c0_46 = arith.constant 0 : index
      %c0_47 = arith.constant 0 : index
      %48 = vector.load %arg7[%c0_45, %c0_46, %c0_47] : memref<1x1x48xf32, #tpu.memory_space<vmem>>, vector<1x1x48xf32>
      %49 = vector.broadcast %47 : vector<1x1x1xf32> to vector<1x1x48xf32>
      %50 = arith.divf %48, %49 : vector<1x1x48xf32>
      %c0_48 = arith.constant 0 : index
      %c0_49 = arith.constant 0 : index
      %c96 = arith.constant 96 : index
      %51 = vector.load %arg5[%c0_48, %c0_49, %c96] : memref<1x1x192xf32, #tpu.memory_space<vmem>>, vector<1x1x48xf32>
      tpu.vector_store %arg5[%c0_48, %c0_49, %c96], %50 {strides = array<i32>} : memref<1x1x192xf32, #tpu.memory_space<vmem>>, vector<1x1x48xf32>,
      %c0_50 = arith.constant 0 : index
      %c0_51 = arith.constant 0 : index
      %c0_52 = arith.constant 0 : index
      %52 = vector.load %arg7[%c0_50, %c0_51, %c0_52] : memref<1x1x48xf32, #tpu.memory_space<vmem>>, vector<1x1x48xf32>
      %53 = math.sqrt %47 : vector<1x1x1xf32>
      %54 = vector.broadcast %53 : vector<1x1x1xf32> to vector<1x1x48xf32>
      %55 = arith.divf %52, %54 : vector<1x1x48xf32>
      %c0_53 = arith.constant 0 : index
      %c0_54 = arith.constant 0 : index
      %c144 = arith.constant 144 : index
      %56 = vector.load %arg5[%c0_53, %c0_54, %c144] : memref<1x1x192xf32, #tpu.memory_space<vmem>>, vector<1x1x48xf32>
      tpu.vector_store %arg5[%c0_53, %c0_54, %c144], %55 {strides = array<i32>} : memref<1x1x192xf32, #tpu.memory_space<vmem>>, vector<1x1x48xf32>,
    } else {
    }
    return
  }
  func.func @transform_0(%arg0: i32, %arg1: i32) -> (i32, i32, i32) {
    %c0_i32 = arith.constant 0 : i32
    %c0_i32_0 = arith.constant 0 : i32
    return %arg0, %arg1, %c0_i32 : i32, i32, i32
  }
  func.func @transform_1(%arg0: i32, %arg1: i32) -> (i32, i32, i32) {
    %c0_i32 = arith.constant 0 : i32
    %c0_i32_0 = arith.constant 0 : i32
    %c0_i32_1 = arith.constant 0 : i32
    return %arg0, %c0_i32, %c0_i32_0 : i32, i32, i32
  }
  func.func @transform_2(%arg0: i32, %arg1: i32) -> (i32, i32, i32) {
    %c0_i32 = arith.constant 0 : i32
    %c0_i32_0 = arith.constant 0 : i32
    return %arg0, %arg1, %c0_i32 : i32, i32, i32
  }
  func.func @transform_3(%arg0: i32, %arg1: i32) -> (i32, i32, i32) {
    %c0_i32 = arith.constant 0 : i32
    %c0_i32_0 = arith.constant 0 : i32
    %c0_i32_1 = arith.constant 0 : i32
    return %arg0, %c0_i32, %c0_i32_0 : i32, i32, i32
  }
}

</mosaic_0001>

<bundles_post_ra>
// kernel: tpu_custom_call.1
= control target key start
LH: loop header
LB: loop body
LE: loop exit
PB: predicated region body
PF: predicated region fallthrough
CT: control target
= control target key end

     0   :  { %8 = vsyncpa [#allocation6], 0  ;;  %s926_s0 = inlined_call_operand.vmem [shape: f32[3,32,1], index: 0, kind: input, shape index: {}]   ;;  %s927_s1 = inlined_call_operand.vmem [shape: f32[3,1,48], index: 1, kind: input, shape index: {}]   ;;  %s928_s2 = inlined_call_operand.vmem [shape: f32[3,28,48], index: 2, kind: input, shape index: {}]   ;;  %s929_s3 = inlined_call_operand.hbm [shape: f32[3,1,192], index: 3, kind: output, shape index: {}]  }
   0x1   :  { %10 = vsyncpa [#allocation6 + $0x1], 0  ;;  %s760_s12 = smov 0   ;;  %s762_s13 = smov 0  }
   0x2   :  { %s764_s14 = smov 0   ;;  %s766_s15 = smov 0  }
   0x3   :  { %s768_s16 = smov 0   ;;  %s770_s17 = smov 0  }
   0x4   :  { %s772_s18 = smov 0   ;;  %s774_s19 = smov 0  }
   0x5 LB: > { %s530_s20 = sadd.s32 4294967295, %s730_s19   ;;  %s531_s21 = sadd.s32 4294967294, %s730_s19   ;;  %s730_s19 = sphi %s774_s19, %s16_s19   ;;  %s726_s18 = sphi %s772_s18, %s945_s18   ;;  %s722_s17 = sphi %s770_s17, %s944_s17   ;;  %s718_s16 = sphi %s768_s16, %s943_s16   ;;  %s714_s15 = sphi %s766_s15, %s942_s15   ;;  %s710_s14 = sphi %s764_s14, %s941_s14   ;;  %s706_s13 = sphi %s762_s13, %s940_s13   ;;  %s702_s12 = sphi %s760_s12, %s939_s12  }
   0x6   : > { %s25_s22 = sadd.s32 1, %s722_s17  ;;  %s28_s23 = sadd.s32 1, %s726_s18 }
   0x7   : > { %p26_p0 = scmp.ge.s32.totalorder %s25_s22, 2  ;;  %p127_p1 = scmp.ne.s32.totalorder %s710_s14, %s706_s13 }
   0x8   : > { %p128_p2 = scmp.eq.s32.totalorder %s530_s20, 5  ;;  %p133_p4 = scmp.ne.s32.totalorder %s706_s13, %s702_s12 }
   0x9   : > { %s947_s22 = smov (%p26_p0, %s25_s22), 0  ;;  %s949_s23 = smov (!%p26_p0, %s28_s23), %s726_s18 }
   0xa   : > { %932 = sst [smem:[#allocation8_spill]] %s947_s22  ;;  %p809_p3 = por %p128_p2, %p127_p1 }
   0xb   : > { %p30_p5 = scmp.ge.s32.totalorder %s949_s23, 3  ;;  %p134_p6 = scmp.eq.s32.totalorder %s531_s21, 5 }
   0xc   : > { %p534_p7 = scmp.ge.s32.totalorder %s730_s19, 1  ;;  %p184_p8 = scmp.lt.s32.totalorder %s730_s19, 7 }
   0xd   : > { %s951_s23 = smov (%p30_p5, %s949_s23), 0  ;;  %p819_p9 = por %p134_p6, %p133_p4 }
   0xe   : > { %934 = sst [smem:[#allocation9_spill]] %s951_s23  ;;  %p185_p10 = pnand %p534_p7, %p184_p8 }
   0xf   : > { %s114_s26 = ssub.s32 %s726_s18, %s951_s23  ;;  %s117_s27 = sadd.s32 1, %s710_s14 }
  0x10   : > { %p115_p11 = scmp.eq.s32.totalorder %s114_s26, 0  ;;  %188 = sbr.rel (%p185_p10) target bundleno = 486 (0x1e6), region = 32 }
  0x11   : > { %s930_s29 = sand.u32 (!%p185_p10), 1, %s706_s13   ;;  %s536_s30 = sshll.u32 (!%p185_p10), %s714_s15, 1 }
  0x12   : > { %s827_s28 = scalar_select %p115_p11, %s710_s14, %s117_s27  }
  0x13   : > { %s535_s4 = sshll.u32 (!%p185_p10), %s930_s29, 1  ;;  %p225_p12 = scmp.lt.s32.totalorder (!%p185_p10), %s718_s16, 2 }
  0x14   : > { %p227_p13 = scmp.lt.s32.totalorder (!%p185_p10), %s536_s30, 3  ;;  %s850_s22 = scalar_lea.vmem (!%p185_p10), [#allocation5], %s535_s4 }
  0x15   : > { %s835_s5 = scalar_select %p225_p12, %s718_s16, 2 }
  0x16   : > { %s953_s30 = smov (!%p227_p13, %s536_s30), 3  ;;  %p542_p0 = scmp.ne.s32.totalorder %s714_s15, 0 }
  0x17   : > { %s537_s6 = sshll.u32 %s835_s5, 2  ;;  %s236_s9 = scalar_lea.vmem %s927_s1, %s835_s5 }
  0x18   : > { %s230_s10 = sadd.s32 %s537_s6, %s953_s30  ;;  %250 = sbr.rel (%p542_p0) target bundleno = 32 (0x20), region = 36 }
  0x19   : > { %s538_s11 = sshll.u32 %s230_s10, 3 }
  0x1a   : > { %s232_s26 = scalar_lea.vmem %s926_s0, %s538_s11  ;;  %s848_s23 = scalar_lea.vmem %s928_s2, %s538_s11 }
  0x1d   : > { %vm251_vm0 = vcmask 385024   ;;  %vm254_vm1 = vcmask 0   ;;  %v732_v0 = vmov -1e+09   ;;  %v733_v1 = vmov 0.0  }
  0x1e   : > { %252 = vst.msk [vmem:[#allocation2] sm:$0x1] %vm251_vm0, %v732_v0  ;;  %253 = vst.msk [vmem:[#allocation3] sm:$0x1] %vm251_vm0, %v733_v1 }
  0x1f   : > { %255 = vst.msk [vmem:[#allocation4] sm:$0x1] %vm254_vm1, %v733_v1 }
  0x20 PF: > { %v258_v2 = vld [vmem:[%s232_s26] sm:$0xff]  ;;  %vm304_vm2 = vcmask 7168   ;;  %v259_v3 = vld [vmem:[%s232_s26 + $0x8] sm:$0xff]  ;;  %v734_v4 = vmov 0   ;;  %vm315_vm5 = vcmask 0   ;;  %v289_v18 = vlaneseq  ;;  %s543_s29 = sshll.u32 %s714_s15, 4 }
  0x21   : > { %630 = vset.pattern.permute.xlu1 %v734_v4  ;;  %629 = vset.pattern.permute.xlu0 %v734_v4  ;;  %v305_v5 = vsel %vm304_vm2, %v258_v2, 0.0  ;;  %vm260_vm3 = vcmp.ne.f32.partialorder %v258_v2, 0.0  ;;  %v306_v6 = vsel %vm304_vm2, %v259_v3, 0.0  ;;  %vm261_vm4 = vcmp.ne.f32.partialorder %v259_v3, 0.0  ;;  %v256_v24 = vld [vmem:[%s848_s23] sm:$0xff]  ;;  %v257_v25 = vld [vmem:[%s848_s23 + $0x8] sm:$0xff] }
  0x22   : > { %320 = vperm.xlu1 %630, %v258_v2   ;;  %v262_v7 = vsel %vm260_vm3, 1, %v734_v4  ;;  %v307_v8 = vadd.f32 %v306_v6, %v305_v5  ;;  %v263_v10 = vsel %vm261_vm4, 1, %v734_v4  ;;  %v855_v19 = vshrl.u32 %v289_v18, 7  ;;  %p544_p1 = scmp.ne.s32.totalorder %s714_s15, 1 }
  0x23   : > { %265 = vperm.xlu0 %629, %v262_v7   ;;  %v292_v20 = vstv %s543_s29  ;;  %vm274_vm9 = vcmask 392192   ;;  %vm286_vm11 = vcmask 385024   ;;  %s736_s30 = smov (!%p544_p1), 96   ;;  %s737_s4 = smov (!%p544_p1), 48  }
  0x24   : > { %v308_v9 = vrot.slane %v307_v8, 4  ;;  %v291_v21 = vadd.s32 8, %v855_v19  ;;  %v293_v22 = vadd.s32 %v292_v20, %v855_v19  ;;  %s738_s5 = smov (!%p544_p1), 16  }
  0x25   : > { %v317_v51 = vld [vmem:[#allocation3] sm:$0x1]  ;;  %v284_v54 = vld [vmem:[#allocation2] sm:$0x1] }
  0x26   : > { %325 = vperm.xlu1 %630, %v259_v3   ;;  %v309_v11 = vadd.f32 %v308_v9, %v307_v8  ;;  %v303_v15 = vld [vmem:[#allocation4] sm:$0x1]  ;;  %v294_v23 = vadd.s32 %v292_v20, %v291_v21  ;;  %vm295_vm6 = vcmp.lt.s32.totalorder %v293_v22, 28 }
  0x27   : > { %268 = vperm.xlu0 %629, %v263_v10   ;;  %v301_v27 = vsel %vm295_vm6, %v256_v24, 0.0 }
  0x28   : > { %v310_v12 = vrot.slane %v309_v11, 2  ;;  %vm296_vm7 = vcmp.lt.s32.totalorder %v294_v23, 28 }
  0x29   : > { %v302_v29 = vsel %vm296_vm7, %v257_v25, 0.0 }
  0x2a   : > { %v311_v13 = vadd.f32 %v310_v12, %v309_v11 }
  0x2c   : > { %v312_v14 = vrot.slane %v311_v13, 1 }
  0x2e   : > { %v313_v16 = vadd.f32 %v312_v14, %v311_v13 }
  0x30   : > { %v314_v17 = vadd.f32 %v313_v16, %v303_v15 }
  0x32   : > { %316 = vst.msk [vmem:[#allocation4] sm:$0x1] %vm315_vm5, %v314_v17 }
  0x9d   : > { %v321_v26 = vpop.permute.xlu1 %320 }
  0x9e   : > { %v266_v28 = vpop.permute.xlu0 %265  ;;  %v328_v30 = vmul.f32 %v321_v26, %v301_v27 }
  0x9f   : > { %vm270_vm8 = vcmp.eq.s32.totalorder %v266_v28, 1 }
  0xa0   : > { %v272_v32 = vsel %vm270_vm8, %v256_v24, -1e+09  ;;  %v330_v35 = vsel %vm274_vm9, %v328_v30, 0.0 }
  0xa1   : > { %v326_v31 = vpop.permute.xlu1 %325  ;;  %v275_v38 = vsel %vm274_vm9, %v272_v32, -inf }
  0xa2   : > { %v329_v33 = vmul.f32 %v326_v31, %v302_v29  ;;  %v269_v34 = vpop.permute.xlu0 %268 }
  0xa3   : > { %vm271_vm10 = vcmp.eq.s32.totalorder %v269_v34, 1 }
  0xa4   : > { %v331_v36 = vsel %vm274_vm9, %v329_v33, 0.0  ;;  %v273_v37 = vsel %vm271_vm10, %v257_v25, -1e+09 }
  0xa5   : > { %v332_v39 = vadd.f32 %v331_v36, %v330_v35  ;;  %v276_v40 = vsel %vm274_vm9, %v273_v37, -inf }
  0xa6   : > { %v277_v41 = vmax.f32 %v275_v38, %v276_v40 }
  0xa7   : > { %v333_v42 = vrot.slane %v332_v39, 4 }
  0xa8   : > { %v278_v43 = vrot.slane %v277_v41, 4 }
  0xa9   : > { %v334_v44 = vadd.f32 %v333_v42, %v332_v39 }
  0xaa   : > { %v279_v45 = vmax.f32 %v277_v41, %v278_v43 }
  0xab   : > { %v335_v46 = vrot.slane %v334_v44, 2 }
  0xac   : > { %v280_v47 = vrot.slane %v279_v45, 2 }
  0xad   : > { %v336_v48 = vadd.f32 %v335_v46, %v334_v44 }
  0xae   : > { %v281_v49 = vmax.f32 %v279_v45, %v280_v47 }
  0xaf   : > { %v337_v50 = vrot.slane %v336_v48, 1 }
  0xb0   : > { %v282_v52 = vrot.slane %v281_v49, 1 }
  0xb1   : > { %v338_v53 = vadd.f32 %v337_v50, %v336_v48 }
  0xb2   : > { %v283_v55 = vmax.f32 %v281_v49, %v282_v52  ;;  %344 = sbr.rel (%p544_p1) target bundleno = 462 (0x1ce), region = 40 }
  0xb3   : > { %v339_v56 = vadd.f32 %v338_v53, %v317_v51 }
  0xb4   : > { %v285_v57 = vmax.f32 %v284_v54, %v283_v55 }
  0xb5   : > { %340 = vst.msk [vmem:[#allocation3] sm:$0x1] %vm286_vm11, %v339_v56 }
  0xb6   : > { %287 = vst.msk [vmem:[#allocation2] sm:$0x1] %vm286_vm11, %v285_v57 }
  0xb7   : > { %v360_v58 = vld [vmem:[#allocation4] sm:$0x1]  ;;  %v735_v59 = vmov 0   ;;  %v370_v2 = vsub.s32 0, %v855_v19  ;;  %v345_v5 = vld [vmem:[%s236_s9] sm:$0x1] }
  0xb8   : > { %631 = vset.pattern.permute.xlu0 %v735_v59  ;;  %v361_v60 = vmax.f32 %v360_v58, 1e-09  ;;  %vm348_vm14 = vcmp.lt.s32.totalorder %v289_v18, 48  ;;  %vm356_vm15 = vcmp.ge.s32.totalorder %v289_v18, 48  ;;  %vm357_vm0 = vcmp.lt.s32.totalorder %v289_v18, 96 }
  0xb9   : > { %350 = vst.msk [vmem:[%s850_s22] sm:$0x1] %vm348_vm14, %v345_v5  ;;  %vm378_vm1 = vcmask 785408   ;;  %vm381_vm2 = vcmp.ge.s32.totalorder %v289_v18, 96  ;;  %vm382_vm3 = vcmp.lt.s32.totalorder %v289_v18, 144  ;;  %vm358_vm4 = vmand %vm356_vm15, %vm357_vm0  ;;  %vm408_vm6 = vcmp.ge.s32.totalorder %v289_v18, 16 }
  0xba   : > { %365 = vperm.xlu0 %631, %v361_v60   ;;  %632 = vrsqrt.f32 %v361_v60  ;;  %vm388_vm12 = vcmp.eq.f32.partialorder %v361_v60, inf  ;;  %v391_v62 = vand.u32 2147483648, %v361_v60  ;;  %vm390_vm13 = vcmp.eq.f32.partialorder %v361_v60, 0.0  ;;  %vm383_vm5 = vmand %vm381_vm2, %vm382_vm3 }
  0xbb   : > { %vm409_vm7 = vcmp.lt.s32.totalorder %v289_v18, 64 }
  0xbc   : > { %v362_v6 = vld [vmem:[#allocation3] sm:$0x1]  ;;  %vm410_vm8 = vmand %vm408_vm6, %vm409_vm7 }
  0xbd   : > { %v351_v11 = vld [vmem:[#allocation2] sm:$0x1]  ;;  %v385_v12 = vld [vmem:[#allocation3] sm:$0x1] }
  0xc7   : > { %v633_v61 = vpop.eup %632 }
  0xc8   : > { %v387_v63 = vmul.f32 %v633_v61, %v361_v60 }
  0xca   : > { %v389_v0 = vsel %vm388_vm12, %v361_v60, %v387_v63 }
  0xcb   : > { %v392_v1 = vsel %vm390_vm13, %v391_v62, %v389_v0 }
  0xcc   : > { %395 = vperm.xlu0 %631, %v392_v1  }
 0x135   : > { %v366_v3 = vpop.permute.xlu0 %365 }
 0x136   : > { %v371_v4 = vrot.slane %v366_v3, %v370_v2 }
 0x138   : > { %634 = vrcp.f32 %v371_v4 }
 0x145   : > { %v635_v7 = vpop.eup %634 }
 0x146   : > { %v373_v8 = vmul.f32 %v635_v7, %v362_v6 }
 0x147   : > { %v396_v9 = vpop.permute.xlu0 %395 }
 0x148   : > { %v401_v10 = vrot.slane %v396_v9, %v370_v2  ;;  %375 = vrot.lane.b32.xlu1 %v373_v8, %s736_s30 }
 0x14a   : > { %636 = vrcp.f32 %v401_v10 }
 0x14c   : > { %353 = vrot.lane.b32.xlu1 %v351_v11, %s737_s4 }
 0x157   : > { %v637_v13 = vpop.eup %636 }
 0x158   : > { %v403_v14 = vmul.f32 %v637_v13, %v385_v12 }
 0x15a   : > { %405 = vrot.lane.b32.xlu0 %v403_v14, %s738_s5 }
 0x1ba   : > { %v376_v15 = vpop.permute.xlu1 %375 }
 0x1bb   : > { %v377_v16 = vrot.slane %v376_v15, 7 }
 0x1bd   : > { %v379_v17 = vsel %vm378_vm1, %v377_v16, %v376_v15 }
 0x1be   : > { %v354_v19 = vpop.permute.xlu1 %353 }
 0x1bf   : > { %359 = vst.msk [vmem:[%s850_s22] sm:$0x1] %vm358_vm4, %v354_v19 }
 0x1c0   : > { %384 = vst.msk [vmem:[%s850_s22] sm:$0x3] %vm383_vm5, %v379_v17 }
 0x1cc   : > { %v406_v20 = vpop.permute.xlu0 %405 }
 0x1cd   : > { %411 = vst.msk [vmem:[%s850_s22 + $0x1] sm:$0x1] %vm410_vm8, %v406_v20 }
 0x1ce PF: > { %s550_s6 = sshll.u32 %s718_s16, 5  ;;  %s427_s10 = sshll.u32 %s850_s22, 4  ;;  %s428_s10 = int_to_ptr.vmem [resolvable:$true] %s427_s10 }
 0x1cf   : > { %s425_s9 = scalar_lea.hbm %s929_s3, %s550_s6  ;;  %s936_s11 = sand.u32 1, %s706_s13  }
 0x1d0   : > { %s413_s20 = scalar_lea.sflag [#allocation6], %s936_s11  ;;  %s638_s21 = scalar_lea.vmem %s428_s10, 32 }
 0x1d1   : > { %p639_p2 = scmp.ne.s32.totalorder %s428_s10, %s638_s21  ;;  %s739_s26 = smov [#allocation5]  }
 0x1d2   : > { %s642_s27 = sshll.u32 %s739_s26, 4  ;;  %s643_s27 = int_to_ptr.vmem [resolvable:$false] %s642_s27 }
 0x1d3   : > { %p640_p4 = pnand %p639_p2, %p809_p3  ;;  %s644_s29 = scalar_lea.vmem %s643_s27, 64 }
 0x1d4   : > { %p645_p6 = scmp.lt.s32.totalorder %s428_s10, %s643_s27  ;;  %p646_p7 = scmp.lt.s32.totalorder %s644_s29, %s638_s21 }
 0x1d5   : > { %p641_p5 = pneg %p640_p4 }
 0x1d6   : > { %p647_p8 = por %p646_p7, %p645_p6 }
 0x1d8   : > { %p648_p10 = pnand %p647_p8, %p641_p5 }
 0x1da   : > { %651 = shalt.err (!%p648_p10)
}
 0x1db   : > { %s652_s16 = scalar_lea.hbm %s425_s9, 32  ;;  %s656_s23 = scalar_lea.hbm %s929_s3, 96 }
 0x1dc   : > { %p653_p11 = scmp.ne.s32.totalorder %s425_s9, %s652_s16  ;;  %p657_p0 = scmp.lt.s32.totalorder %s425_s9, %s929_s3 }
 0x1dd   : > { %p658_p1 = scmp.lt.s32.totalorder %s656_s23, %s652_s16 }
 0x1de   : > { %p654_p12 = pnand %p653_p11, %p809_p3 }
 0x1df   : > { %p659_p2 = por %p658_p1, %p657_p0 }
 0x1e0   : > { %p655_p13 = pneg %p654_p12 }
 0x1e2   : > { %p660_p4 = pnand %p659_p2, %p655_p13 }
 0x1e4   : > { %663 = shalt.err (!%p660_p4)
}
 0x1e5   : > { %551 = dma.vmem_to_hbm [thread:$0]  (%p809_p3), %s428_s10, 32, %s425_s9, %s413_s20  }
 0x1e6 PF: > { %p557_p5 = scmp.ge.s32.totalorder %s730_s19, 2  ;;  %s439_s5 = sand.u32 1, %s702_s12  }
 0x1e7   : > { %s440_s6 = scalar_lea.sflag [#allocation6], %s439_s5 }
 0x1e8   : > { %p554_p6 = pnand %p557_p5, %p819_p9 }
 0x1ea   : > { %p555_p7 = pneg %p554_p6 }
 0x1ec   : > { %697 = dma.done.wait (%p555_p7), %s440_s6, 32  }
 0x1ed   : > { %699 = vsyncadd (%p555_p7), %s440_s6, 4294967264  ;;  %s16_s19 = sadd.s32 1, %s730_s19   ;;  %s937_s24 = sld [smem:[#allocation8_spill]] }
 0x1ee   : > { %p13_p8 = scmp.ge.s32.totalorder %s16_s19, 8   ;;  %s938_s7 = sld [smem:[#allocation9_spill]] }
 0x1ef   : > { %s939_s12 = smov %s706_s13  ;;  %s940_s13 = smov %s710_s14 }
 0x1f0   : > { %s941_s14 = smov %s827_s28  ;;  %s942_s15 = smov %s722_s17 }
 0x1f1   : > { %s943_s16 = smov %s726_s18  ;;  %15 = sbr.rel (!%p13_p8) target bundleno = 5 (0x5), region = 81 }
 0x1f3   : > { %s944_s17 = smov %s937_s24 }
 0x1f4   : > { %s945_s18 = smov %s938_s7 }
 0x1f6   :  { %445 = vsyncpa [#allocation6], 1 }
 0x1f7   :  { %447 = vsyncpa [#allocation6 + $0x1], 1 }

</bundles_post_ra>
